<compile_context>
chip_gen: v7x
topology: tpu7x:2x2x1
jax: 0.10.0
libtpu: 0.0.40
codegen_flags: <defaults>
</compile_context>

<pallas_src>
import functools

import jax
import jax.numpy as jnp
from jax import lax
from jax.experimental import pallas as pl
from jax.experimental.pallas import tpu as pltpu

LN_EPS = 1e-5
LANE = 128
SUBLANE = 8


def _round_up(x, m):
    return (x + m - 1) // m * m


def _tpu_vmem_bytes():
    try:
        return int(pltpu.get_tpu_info().vmem_capacity_bytes)
    except Exception:
        return None


def _masked_layernorm_relu(y, gamma, beta, valid, total):
    """LayerNorm over the last axis (only the first `valid` of `total` columns are
    real data), then ReLU.  y is f32 (tm, total).  gamma/beta are zero in padded
    columns, so padded outputs are exactly 0 regardless of padded y values."""
    if valid == total:
        mean = jnp.mean(y, axis=-1, keepdims=True)
        yc = y - mean
        var = jnp.mean(yc * yc, axis=-1, keepdims=True)
    else:
        inv_n = 1.0 / float(valid)
        mask = lax.broadcasted_iota(jnp.int32, y.shape, 1) < valid
        ym = jnp.where(mask, y, 0.0)
        mean = jnp.sum(ym, axis=-1, keepdims=True) * inv_n
        yc = jnp.where(mask, y - mean, 0.0)
        var = jnp.sum(yc * yc, axis=-1, keepdims=True) * inv_n
    inv = lax.rsqrt(var + LN_EPS)
    return jnp.maximum(yc * inv * gamma + beta, 0.0)


def _mlp_fused_kernel(x_ref, w1_ref, b1_ref, g1_ref, be1_ref,
                      w2_ref, b2_ref, g2_ref, be2_ref, o_ref,
                      *, hidden_valid, hidden_total, out_valid, out_total):
    """o = relu(LN(relu(LN(x @ W1 + b1)) @ W2 + b2)) for one row tile.

    x_ref:  (tm, Din_p)   streamed row tile (f32 or bf16)
    w*_ref: lane-padded bf16 residents; o_ref: (tm, Dout_p)
    """
    # ---- layer 1: Linear -> LayerNorm -> ReLU (dropout = identity, eval) ----
    x = x_ref[...].astype(w1_ref.dtype)                 # bf16 MXU inputs
    y1 = jnp.dot(x, w1_ref[...], preferred_element_type=jnp.float32)
    y1 = y1 + b1_ref[...].astype(jnp.float32)
    h = _masked_layernorm_relu(y1,
                               g1_ref[...].astype(jnp.float32),
                               be1_ref[...].astype(jnp.float32),
                               hidden_valid, hidden_total)

    # ---- layer 2: intermediate h never leaves VMEM ----
    y2 = jnp.dot(h.astype(w2_ref.dtype), w2_ref[...],
                 preferred_element_type=jnp.float32)
    y2 = y2 + b2_ref[...].astype(jnp.float32)
    o = _masked_layernorm_relu(y2,
                               g2_ref[...].astype(jnp.float32),
                               be2_ref[...].astype(jnp.float32),
                               out_valid, out_total)
    o_ref[...] = o.astype(o_ref.dtype)


def prepare_params(params, compute_dtype=jnp.bfloat16):
    """Casts to compute_dtype and lane-pads (multiples of 128) exactly ONCE, so
    the per-call wrapper never re-pads / re-copies the weights in HBM."""
    w1, w2 = params["w1"], params["w2"]
    input_dim, hidden_dim = w1.shape
    out_dim = w2.shape[1]
    din_p = _round_up(input_dim, LANE)
    dh_p = _round_up(hidden_dim, LANE)
    do_p = _round_up(out_dim, LANE)

    def pad2(a, rows, cols):
        a = a.astype(compute_dtype)
        if a.shape == (rows, cols):
            return a
        return jnp.pad(a, ((0, rows - a.shape[0]), (0, cols - a.shape[1])))

    return {
        "w1": pad2(params["w1"], din_p, dh_p),
        "b1": pad2(params["b1"], 1, dh_p),
        "g1": pad2(params["g1"], 1, dh_p),
        "be1": pad2(params["be1"], 1, dh_p),
        "w2": pad2(params["w2"], dh_p, do_p),
        "b2": pad2(params["b2"], 1, do_p),
        "g2": pad2(params["g2"], 1, do_p),
        "be2": pad2(params["be2"], 1, do_p),
        "input_dim": int(input_dim),
        "hidden_dim": int(hidden_dim),
        "out_dim": int(out_dim),
    }


def mlp_forward(x, prepped, *, tm=None, vmem_limit_bytes=None):
    """Applies the fused two-layer MLP to x of shape (..., input_dim)."""
    orig_shape = x.shape
    input_dim = prepped["input_dim"]
    hidden_dim = prepped["hidden_dim"]
    out_dim = prepped["out_dim"]

    x2d = x.reshape(-1, input_dim)
    n_rows = x2d.shape[0]

    din_p, dh_p = prepped["w1"].shape
    do_p = prepped["w2"].shape[1]

    # Generation-aware defaults.
    vmem_cap = _tpu_vmem_bytes()
    if vmem_limit_bytes is None:
        vmem_limit_bytes = int(0.65 * vmem_cap) if vmem_cap else 48 * 1024 * 1024
    if tm is None:
        tm = 512 if (vmem_cap is not None and vmem_cap >= 100 * 1024 * 1024) else 256

    # Row tile: as big as allowed, but guarantee >=2 grid steps when possible so
    # both v7x TensorCores get work (no effect on single-TC v5e/v6e).
    row_mult = 16 if x.dtype == jnp.bfloat16 else SUBLANE
    if n_rows <= 2 * tm:
        tm_eff = min(tm, _round_up(max(1, -(-n_rows // 2)), row_mult))
    else:
        tm_eff = tm
    tm_eff = max(row_mult, _round_up(tm_eff, row_mult))
    n_p = _round_up(n_rows, tm_eff)
    grid = (n_p // tm_eff,)

    # Only x is padded per call, and only when it actually needs padding.
    if (n_p, din_p) != (n_rows, input_dim):
        xp = jnp.pad(x2d, ((0, n_p - n_rows), (0, din_p - input_dim)))
    else:
        xp = x2d

    kernel = functools.partial(
        _mlp_fused_kernel,
        hidden_valid=hidden_dim, hidden_total=dh_p,
        out_valid=out_dim, out_total=do_p,
    )

    def build_and_run(single_buffer_weights):
        if single_buffer_weights:
            def w_spec(shape):
                return pl.BlockSpec(shape, lambda i: (0, 0),
                                    pipeline_mode=pl.Buffered(1))
        else:
            def w_spec(shape):
                return pl.BlockSpec(shape, lambda i: (0, 0))

        return pl.pallas_call(
            kernel,
            out_shape=jax.ShapeDtypeStruct((n_p, do_p), x.dtype),
            grid_spec=pltpu.PrefetchScalarGridSpec(
                num_scalar_prefetch=0,
                grid=grid,
                in_specs=[
                    pl.BlockSpec((tm_eff, din_p), lambda i: (i, 0)),  # x (streamed)
                    w_spec((din_p, dh_p)),                            # W1 (resident)
                    w_spec((1, dh_p)),                                # b1
                    w_spec((1, dh_p)),                                # gamma1
                    w_spec((1, dh_p)),                                # beta1
                    w_spec((dh_p, do_p)),                             # W2 (resident)
                    w_spec((1, do_p)),                                # b2
                    w_spec((1, do_p)),                                # gamma2
                    w_spec((1, do_p)),                                # beta2
                ],
                out_specs=pl.BlockSpec((tm_eff, do_p), lambda i: (i, 0)),
            ),
            compiler_params=pltpu.CompilerParams(
                dimension_semantics=("parallel",),
                vmem_limit_bytes=vmem_limit_bytes,
            ),
        )(xp, prepped["w1"], prepped["b1"], prepped["g1"], prepped["be1"],
          prepped["w2"], prepped["b2"], prepped["g2"], prepped["be2"])

    try:
        out_p = build_and_run(True)
    except Exception:
        # TODO(synk): drop this fallback once pl.Buffered(1) on pallas_call
        # BlockSpecs is guaranteed available on the deployed JAX version.
        out_p = build_and_run(False)

    out = out_p[:n_rows, :out_dim]
    return out.reshape(*orig_shape[:-1], out_dim)


def init_params(key, input_dim, hidden_dim, out_dim, dtype=jnp.float32):
    """nn.Linear / nn.LayerNorm-shaped params (weights stored (in, out))."""
    k1, k2, k3, k4 = jax.random.split(key, 4)
    lim1 = float(1.0 / (input_dim ** 0.5))
    lim2 = float(1.0 / (hidden_dim ** 0.5))
    return {
        "w1": jax.random.uniform(k1, (input_dim, hidden_dim), dtype, -lim1, lim1),
        "b1": jax.random.uniform(k2, (1, hidden_dim), dtype, -lim1, lim1),
        "g1": jnp.ones((1, hidden_dim), dtype),
        "be1": jnp.zeros((1, hidden_dim), dtype),
        "w2": jax.random.uniform(k3, (hidden_dim, out_dim), dtype, -lim2, lim2),
        "b2": jax.random.uniform(k4, (1, out_dim), dtype, -lim2, lim2),
        "g2": jnp.ones((1, out_dim), dtype),
        "be2": jnp.zeros((1, out_dim), dtype),
    }


def mlp_reference(x, p, compute_dtype=jnp.bfloat16):
    """Pure-JAX reference (eval-mode forward, ReLU activation) with the same
    bf16 matmul inputs / f32 accumulation as the kernel."""
    def block(xb, w, b, g, be):
        y = jnp.dot(xb.astype(compute_dtype), w.astype(compute_dtype),
                    preferred_element_type=jnp.float32)
        y = y + b.astype(jnp.float32)
        mu = jnp.mean(y, axis=-1, keepdims=True)
        var = jnp.mean((y - mu) ** 2, axis=-1, keepdims=True)
        y = (y - mu) * lax.rsqrt(var + LN_EPS) * g.astype(jnp.float32) \
            + be.astype(jnp.float32)
        return jnp.maximum(y, 0.0)

    h = block(x, p["w1"], p["b1"], p["g1"], p["be1"])
    return block(h, p["w2"], p["b2"], p["g2"], p["be2"])


if __name__ == "__main__":
    key = jax.random.PRNGKey(0)
    kx, kp = jax.random.split(key)

    batch, seq, input_dim, hidden_dim, out_dim = 2, 8, 32, 64, 32

    x = jax.random.normal(kx, (batch, seq, input_dim), jnp.float32)
    params = init_params(kp, input_dim, hidden_dim, out_dim, dtype=jnp.bfloat16)
    prepped = prepare_params(params)          # bf16 cast + lane-pad exactly once

    out = mlp_forward(x, prepped)             # (2, 8, 32)
    jax.block_until_ready(out)

    ref = mlp_reference(x.reshape(-1, input_dim), params).reshape(batch, seq, out_dim)
    assert out.shape == (batch, seq, out_dim)
    # bf16 MXU inputs -> looser tolerance than the old all-f32 path.
    assert jnp.allclose(out, ref, atol=2e-2, rtol=2e-2), "mismatch vs reference"

    print("KERNEL_OK")
</pallas_src>

<mosaic_0001>
module attributes {stable_mosaic.version = 11 : i64} {
  func.func @_mlp_fused_kernel(%arg0: i32, %arg1: memref<8x128xf32, #tpu.memory_space<vmem>>, %arg2: memref<128x128xbf16, #tpu.memory_space<vmem>>, %arg3: memref<1x128xbf16, #tpu.memory_space<vmem>>, %arg4: memref<1x128xbf16, #tpu.memory_space<vmem>>, %arg5: memref<1x128xbf16, #tpu.memory_space<vmem>>, %arg6: memref<128x128xbf16, #tpu.memory_space<vmem>>, %arg7: memref<1x128xbf16, #tpu.memory_space<vmem>>, %arg8: memref<1x128xbf16, #tpu.memory_space<vmem>>, %arg9: memref<1x128xbf16, #tpu.memory_space<vmem>>, %arg10: memref<8x128xf32, #tpu.memory_space<vmem>>) attributes {dimension_semantics = [#tpu.dimension_semantics<parallel>], iteration_bounds = array<i64: 2>, scalar_prefetch = 0 : i64, scratch_operands = 0 : i64, tpu.core_type = #tpu.core_type<tc>, window_params = [{transform_indices = @transform_0, window_bounds = array<i64: 8, 128>}, {pipeline_mode = #tpu.pipeline_mode<synchronous>, transform_indices = @transform_1, window_bounds = array<i64: 128, 128>}, {pipeline_mode = #tpu.pipeline_mode<synchronous>, transform_indices = @transform_2, window_bounds = array<i64: 1, 128>}, {pipeline_mode = #tpu.pipeline_mode<synchronous>, transform_indices = @transform_3, window_bounds = array<i64: 1, 128>}, {pipeline_mode = #tpu.pipeline_mode<synchronous>, transform_indices = @transform_4, window_bounds = array<i64: 1, 128>}, {pipeline_mode = #tpu.pipeline_mode<synchronous>, transform_indices = @transform_5, window_bounds = array<i64: 128, 128>}, {pipeline_mode = #tpu.pipeline_mode<synchronous>, transform_indices = @transform_6, window_bounds = array<i64: 1, 128>}, {pipeline_mode = #tpu.pipeline_mode<synchronous>, transform_indices = @transform_7, window_bounds = array<i64: 1, 128>}, {pipeline_mode = #tpu.pipeline_mode<synchronous>, transform_indices = @transform_8, window_bounds = array<i64: 1, 128>}, {transform_indices = @transform_9, window_bounds = array<i64: 8, 128>}]} {
    %c0 = arith.constant 0 : index
    %c0_0 = arith.constant 0 : index
    %0 = vector.load %arg1[%c0, %c0_0] : memref<8x128xf32, #tpu.memory_space<vmem>>, vector<8x128xf32>
    %1 = arith.truncf %0 : vector<8x128xf32> to vector<8x128xbf16>
    %c0_1 = arith.constant 0 : index
    %c0_2 = arith.constant 0 : index
    %2 = vector.load %arg2[%c0_1, %c0_2] : memref<128x128xbf16, #tpu.memory_space<vmem>>, vector<128x128xbf16>
    %cst = arith.constant dense<0.000000e+00> : vector<8x128xf32>
    %3 = tpu.matmul %1, %2, %cst {dimension_numbers = #tpu.dot_dimension_numbers<[1], [0], [0], [1], [0, 0, 1, 1], [], []>} : vector<8x128xbf16>, vector<128x128xbf16>, vector<8x128xf32> -> vector<8x128xf32>
    %c0_3 = arith.constant 0 : index
    %c0_4 = arith.constant 0 : index
    %4 = vector.load %arg3[%c0_3, %c0_4] : memref<1x128xbf16, #tpu.memory_space<vmem>>, vector<1x128xbf16>
    %5 = arith.extf %4 : vector<1x128xbf16> to vector<1x128xf32>
    %6 = vector.broadcast %5 : vector<1x128xf32> to vector<8x128xf32>
    %7 = arith.addf %3, %6 : vector<8x128xf32>
    %c0_5 = arith.constant 0 : index
    %c0_6 = arith.constant 0 : index
    %8 = vector.load %arg4[%c0_5, %c0_6] : memref<1x128xbf16, #tpu.memory_space<vmem>>, vector<1x128xbf16>
    %9 = arith.extf %8 : vector<1x128xbf16> to vector<1x128xf32>
    %c0_7 = arith.constant 0 : index
    %c0_8 = arith.constant 0 : index
    %10 = vector.load %arg5[%c0_7, %c0_8] : memref<1x128xbf16, #tpu.memory_space<vmem>>, vector<1x128xbf16>
    %11 = arith.extf %10 : vector<1x128xbf16> to vector<1x128xf32>
    %12 = tpu.iota {dimensions = array<i32: 1>} : vector<8x128xi32>
    %c64_i32 = arith.constant 64 : i32
    %13 = vector.broadcast %c64_i32 : i32 to vector<8x128xi32>
    %14 = arith.cmpi slt, %12, %13 : vector<8x128xi32>
    %cst_9 = arith.constant 0.000000e+00 : f32
    %15 = vector.broadcast %cst_9 : f32 to vector<8x128xf32>
    %16 = arith.select %14, %7, %15 : vector<8x128xi1>, vector<8x128xf32>
    %cst_10 = arith.constant dense<0.000000e+00> : vector<8xf32>
    %17 = vector.multi_reduction <add>, %16, %cst_10 [1] : vector<8x128xf32> to vector<8xf32>
    %18 = vector.shape_cast %17 : vector<8xf32> to vector<8x1xf32>
    %cst_11 = arith.constant 1.562500e-02 : f32
    %19 = vector.broadcast %cst_11 : f32 to vector<8x1xf32>
    %20 = arith.mulf %18, %19 : vector<8x1xf32>
    %21 = vector.broadcast %20 : vector<8x1xf32> to vector<8x128xf32>
    %22 = arith.subf %7, %21 : vector<8x128xf32>
    %cst_12 = arith.constant 0.000000e+00 : f32
    %23 = vector.broadcast %cst_12 : f32 to vector<8x128xf32>
    %24 = arith.select %14, %22, %23 : vector<8x128xi1>, vector<8x128xf32>
    %25 = arith.mulf %24, %24 : vector<8x128xf32>
    %cst_13 = arith.constant dense<0.000000e+00> : vector<8xf32>
    %26 = vector.multi_reduction <add>, %25, %cst_13 [1] : vector<8x128xf32> to vector<8xf32>
    %27 = vector.shape_cast %26 : vector<8xf32> to vector<8x1xf32>
    %cst_14 = arith.constant 1.562500e-02 : f32
    %28 = vector.broadcast %cst_14 : f32 to vector<8x1xf32>
    %29 = arith.mulf %27, %28 : vector<8x1xf32>
    %cst_15 = arith.constant 9.99999974E-6 : f32
    %30 = vector.broadcast %cst_15 : f32 to vector<8x1xf32>
    %31 = arith.addf %29, %30 : vector<8x1xf32>
    %32 = math.rsqrt %31 : vector<8x1xf32>
    %33 = vector.broadcast %32 : vector<8x1xf32> to vector<8x128xf32>
    %34 = arith.mulf %24, %33 : vector<8x128xf32>
    %35 = vector.broadcast %9 : vector<1x128xf32> to vector<8x128xf32>
    %36 = arith.mulf %34, %35 : vector<8x128xf32>
    %37 = vector.broadcast %11 : vector<1x128xf32> to vector<8x128xf32>
    %38 = arith.addf %36, %37 : vector<8x128xf32>
    %cst_16 = arith.constant 0.000000e+00 : f32
    %39 = vector.broadcast %cst_16 : f32 to vector<8x128xf32>
    %40 = arith.maximumf %38, %39 : vector<8x128xf32>
    %41 = arith.truncf %40 : vector<8x128xf32> to vector<8x128xbf16>
    %c0_17 = arith.constant 0 : index
    %c0_18 = arith.constant 0 : index
    %42 = vector.load %arg6[%c0_17, %c0_18] : memref<128x128xbf16, #tpu.memory_space<vmem>>, vector<128x128xbf16>
    %cst_19 = arith.constant dense<0.000000e+00> : vector<8x128xf32>
    %43 = tpu.matmul %41, %42, %cst_19 {dimension_numbers = #tpu.dot_dimension_numbers<[1], [0], [0], [1], [0, 0, 1, 1], [], []>} : vector<8x128xbf16>, vector<128x128xbf16>, vector<8x128xf32> -> vector<8x128xf32>
    %c0_20 = arith.constant 0 : index
    %c0_21 = arith.constant 0 : index
    %44 = vector.load %arg7[%c0_20, %c0_21] : memref<1x128xbf16, #tpu.memory_space<vmem>>, vector<1x128xbf16>
    %45 = arith.extf %44 : vector<1x128xbf16> to vector<1x128xf32>
    %46 = vector.broadcast %45 : vector<1x128xf32> to vector<8x128xf32>
    %47 = arith.addf %43, %46 : vector<8x128xf32>
    %c0_22 = arith.constant 0 : index
    %c0_23 = arith.constant 0 : index
    %48 = vector.load %arg8[%c0_22, %c0_23] : memref<1x128xbf16, #tpu.memory_space<vmem>>, vector<1x128xbf16>
    %49 = arith.extf %48 : vector<1x128xbf16> to vector<1x128xf32>
    %c0_24 = arith.constant 0 : index
    %c0_25 = arith.constant 0 : index
    %50 = vector.load %arg9[%c0_24, %c0_25] : memref<1x128xbf16, #tpu.memory_space<vmem>>, vector<1x128xbf16>
    %51 = arith.extf %50 : vector<1x128xbf16> to vector<1x128xf32>
    %52 = tpu.iota {dimensions = array<i32: 1>} : vector<8x128xi32>
    %c32_i32 = arith.constant 32 : i32
    %53 = vector.broadcast %c32_i32 : i32 to vector<8x128xi32>
    %54 = arith.cmpi slt, %52, %53 : vector<8x128xi32>
    %cst_26 = arith.constant 0.000000e+00 : f32
    %55 = vector.broadcast %cst_26 : f32 to vector<8x128xf32>
    %56 = arith.select %54, %47, %55 : vector<8x128xi1>, vector<8x128xf32>
    %cst_27 = arith.constant dense<0.000000e+00> : vector<8xf32>
    %57 = vector.multi_reduction <add>, %56, %cst_27 [1] : vector<8x128xf32> to vector<8xf32>
    %58 = vector.shape_cast %57 : vector<8xf32> to vector<8x1xf32>
    %cst_28 = arith.constant 3.125000e-02 : f32
    %59 = vector.broadcast %cst_28 : f32 to vector<8x1xf32>
    %60 = arith.mulf %58, %59 : vector<8x1xf32>
    %61 = vector.broadcast %60 : vector<8x1xf32> to vector<8x128xf32>
    %62 = arith.subf %47, %61 : vector<8x128xf32>
    %cst_29 = arith.constant 0.000000e+00 : f32
    %63 = vector.broadcast %cst_29 : f32 to vector<8x128xf32>
    %64 = arith.select %54, %62, %63 : vector<8x128xi1>, vector<8x128xf32>
    %65 = arith.mulf %64, %64 : vector<8x128xf32>
    %cst_30 = arith.constant dense<0.000000e+00> : vector<8xf32>
    %66 = vector.multi_reduction <add>, %65, %cst_30 [1] : vector<8x128xf32> to vector<8xf32>
    %67 = vector.shape_cast %66 : vector<8xf32> to vector<8x1xf32>
    %cst_31 = arith.constant 3.125000e-02 : f32
    %68 = vector.broadcast %cst_31 : f32 to vector<8x1xf32>
    %69 = arith.mulf %67, %68 : vector<8x1xf32>
    %cst_32 = arith.constant 9.99999974E-6 : f32
    %70 = vector.broadcast %cst_32 : f32 to vector<8x1xf32>
    %71 = arith.addf %69, %70 : vector<8x1xf32>
    %72 = math.rsqrt %71 : vector<8x1xf32>
    %73 = vector.broadcast %72 : vector<8x1xf32> to vector<8x128xf32>
    %74 = arith.mulf %64, %73 : vector<8x128xf32>
    %75 = vector.broadcast %49 : vector<1x128xf32> to vector<8x128xf32>
    %76 = arith.mulf %74, %75 : vector<8x128xf32>
    %77 = vector.broadcast %51 : vector<1x128xf32> to vector<8x128xf32>
    %78 = arith.addf %76, %77 : vector<8x128xf32>
    %cst_33 = arith.constant 0.000000e+00 : f32
    %79 = vector.broadcast %cst_33 : f32 to vector<8x128xf32>
    %80 = arith.maximumf %78, %79 : vector<8x128xf32>
    %c0_34 = arith.constant 0 : index
    %c0_35 = arith.constant 0 : index
    %81 = vector.load %arg10[%c0_34, %c0_35] : memref<8x128xf32, #tpu.memory_space<vmem>>, vector<8x128xf32>
    tpu.vector_store %arg10[%c0_34, %c0_35], %80 {strides = array<i32>} : memref<8x128xf32, #tpu.memory_space<vmem>>, vector<8x128xf32>,
    return
  }
  func.func @transform_0(%arg0: i32) -> (i32, i32) {
    %c0_i32 = arith.constant 0 : i32
    %c0_i32_0 = arith.constant 0 : i32
    return %arg0, %c0_i32 : i32, i32
  }
  func.func @transform_1(%arg0: i32) -> (i32, i32) {
    %c0_i32 = arith.constant 0 : i32
    %c0_i32_0 = arith.constant 0 : i32
    %c0_i32_1 = arith.constant 0 : i32
    return %c0_i32, %c0_i32_0 : i32, i32
  }
  func.func @transform_2(%arg0: i32) -> (i32, i32) {
    %c0_i32 = arith.constant 0 : i32
    %c0_i32_0 = arith.constant 0 : i32
    %c0_i32_1 = arith.constant 0 : i32
    return %c0_i32, %c0_i32_0 : i32, i32
  }
  func.func @transform_3(%arg0: i32) -> (i32, i32) {
    %c0_i32 = arith.constant 0 : i32
    %c0_i32_0 = arith.constant 0 : i32
    %c0_i32_1 = arith.constant 0 : i32
    return %c0_i32, %c0_i32_0 : i32, i32
  }
  func.func @transform_4(%arg0: i32) -> (i32, i32) {
    %c0_i32 = arith.constant 0 : i32
    %c0_i32_0 = arith.constant 0 : i32
    %c0_i32_1 = arith.constant 0 : i32
    return %c0_i32, %c0_i32_0 : i32, i32
  }
  func.func @transform_5(%arg0: i32) -> (i32, i32) {
    %c0_i32 = arith.constant 0 : i32
    %c0_i32_0 = arith.constant 0 : i32
    %c0_i32_1 = arith.constant 0 : i32
    return %c0_i32, %c0_i32_0 : i32, i32
  }
  func.func @transform_6(%arg0: i32) -> (i32, i32) {
    %c0_i32 = arith.constant 0 : i32
    %c0_i32_0 = arith.constant 0 : i32
    %c0_i32_1 = arith.constant 0 : i32
    return %c0_i32, %c0_i32_0 : i32, i32
  }
  func.func @transform_7(%arg0: i32) -> (i32, i32) {
    %c0_i32 = arith.constant 0 : i32
    %c0_i32_0 = arith.constant 0 : i32
    %c0_i32_1 = arith.constant 0 : i32
    return %c0_i32, %c0_i32_0 : i32, i32
  }
  func.func @transform_8(%arg0: i32) -> (i32, i32) {
    %c0_i32 = arith.constant 0 : i32
    %c0_i32_0 = arith.constant 0 : i32
    %c0_i32_1 = arith.constant 0 : i32
    return %c0_i32, %c0_i32_0 : i32, i32
  }
  func.func @transform_9(%arg0: i32) -> (i32, i32) {
    %c0_i32 = arith.constant 0 : i32
    %c0_i32_0 = arith.constant 0 : i32
    return %arg0, %c0_i32 : i32, i32
  }
}

module attributes {stable_mosaic.version = 11 : i64} {
  func.func @_mlp_fused_kernel(%arg0: i32, %arg1: memref<8x128xf32, #tpu.memory_space<vmem>>, %arg2: memref<128x128xbf16, #tpu.memory_space<vmem>>, %arg3: memref<1x128xbf16, #tpu.memory_space<vmem>>, %arg4: memref<1x128xbf16, #tpu.memory_space<vmem>>, %arg5: memref<1x128xbf16, #tpu.memory_space<vmem>>, %arg6: memref<128x128xbf16, #tpu.memory_space<vmem>>, %arg7: memref<1x128xbf16, #tpu.memory_space<vmem>>, %arg8: memref<1x128xbf16, #tpu.memory_space<vmem>>, %arg9: memref<1x128xbf16, #tpu.memory_space<vmem>>, %arg10: memref<8x128xf32, #tpu.memory_space<vmem>>) attributes {dimension_semantics = [#tpu.dimension_semantics<parallel>], iteration_bounds = array<i64: 2>, scalar_prefetch = 0 : i64, scratch_operands = 0 : i64, tpu.core_type = #tpu.core_type<tc>, window_params = [{transform_indices = @transform_0, window_bounds = array<i64: 8, 128>}, {pipeline_mode = #tpu.pipeline_mode<synchronous>, transform_indices = @transform_1, window_bounds = array<i64: 128, 128>}, {pipeline_mode = #tpu.pipeline_mode<synchronous>, transform_indices = @transform_2, window_bounds = array<i64: 1, 128>}, {pipeline_mode = #tpu.pipeline_mode<synchronous>, transform_indices = @transform_3, window_bounds = array<i64: 1, 128>}, {pipeline_mode = #tpu.pipeline_mode<synchronous>, transform_indices = @transform_4, window_bounds = array<i64: 1, 128>}, {pipeline_mode = #tpu.pipeline_mode<synchronous>, transform_indices = @transform_5, window_bounds = array<i64: 128, 128>}, {pipeline_mode = #tpu.pipeline_mode<synchronous>, transform_indices = @transform_6, window_bounds = array<i64: 1, 128>}, {pipeline_mode = #tpu.pipeline_mode<synchronous>, transform_indices = @transform_7, window_bounds = array<i64: 1, 128>}, {pipeline_mode = #tpu.pipeline_mode<synchronous>, transform_indices = @transform_8, window_bounds = array<i64: 1, 128>}, {transform_indices = @transform_9, window_bounds = array<i64: 8, 128>}]} {
    %c0 = arith.constant 0 : index
    %c0_0 = arith.constant 0 : index
    %0 = vector.load %arg1[%c0, %c0_0] : memref<8x128xf32, #tpu.memory_space<vmem>>, vector<8x128xf32>
    %1 = arith.truncf %0 : vector<8x128xf32> to vector<8x128xbf16>
    %c0_1 = arith.constant 0 : index
    %c0_2 = arith.constant 0 : index
    %2 = vector.load %arg2[%c0_1, %c0_2] : memref<128x128xbf16, #tpu.memory_space<vmem>>, vector<128x128xbf16>
    %cst = arith.constant dense<0.000000e+00> : vector<8x128xf32>
    %3 = tpu.matmul %1, %2, %cst {dimension_numbers = #tpu.dot_dimension_numbers<[1], [0], [0], [1], [0, 0, 1, 1], [], []>} : vector<8x128xbf16>, vector<128x128xbf16>, vector<8x128xf32> -> vector<8x128xf32>
    %c0_3 = arith.constant 0 : index
    %c0_4 = arith.constant 0 : index
    %4 = vector.load %arg3[%c0_3, %c0_4] : memref<1x128xbf16, #tpu.memory_space<vmem>>, vector<1x128xbf16>
    %5 = arith.extf %4 : vector<1x128xbf16> to vector<1x128xf32>
    %6 = vector.broadcast %5 : vector<1x128xf32> to vector<8x128xf32>
    %7 = arith.addf %3, %6 : vector<8x128xf32>
    %c0_5 = arith.constant 0 : index
    %c0_6 = arith.constant 0 : index
    %8 = vector.load %arg4[%c0_5, %c0_6] : memref<1x128xbf16, #tpu.memory_space<vmem>>, vector<1x128xbf16>
    %9 = arith.extf %8 : vector<1x128xbf16> to vector<1x128xf32>
    %c0_7 = arith.constant 0 : index
    %c0_8 = arith.constant 0 : index
    %10 = vector.load %arg5[%c0_7, %c0_8] : memref<1x128xbf16, #tpu.memory_space<vmem>>, vector<1x128xbf16>
    %11 = arith.extf %10 : vector<1x128xbf16> to vector<1x128xf32>
    %12 = tpu.iota {dimensions = array<i32: 1>} : vector<8x128xi32>
    %c64_i32 = arith.constant 64 : i32
    %13 = vector.broadcast %c64_i32 : i32 to vector<8x128xi32>
    %14 = arith.cmpi slt, %12, %13 : vector<8x128xi32>
    %cst_9 = arith.constant 0.000000e+00 : f32
    %15 = vector.broadcast %cst_9 : f32 to vector<8x128xf32>
    %16 = arith.select %14, %7, %15 : vector<8x128xi1>, vector<8x128xf32>
    %cst_10 = arith.constant dense<0.000000e+00> : vector<8xf32>
    %17 = vector.multi_reduction <add>, %16, %cst_10 [1] : vector<8x128xf32> to vector<8xf32>
    %18 = vector.shape_cast %17 : vector<8xf32> to vector<8x1xf32>
    %cst_11 = arith.constant 1.562500e-02 : f32
    %19 = vector.broadcast %cst_11 : f32 to vector<8x1xf32>
    %20 = arith.mulf %18, %19 : vector<8x1xf32>
    %21 = vector.broadcast %20 : vector<8x1xf32> to vector<8x128xf32>
    %22 = arith.subf %7, %21 : vector<8x128xf32>
    %cst_12 = arith.constant 0.000000e+00 : f32
    %23 = vector.broadcast %cst_12 : f32 to vector<8x128xf32>
    %24 = arith.select %14, %22, %23 : vector<8x128xi1>, vector<8x128xf32>
    %25 = arith.mulf %24, %24 : vector<8x128xf32>
    %cst_13 = arith.constant dense<0.000000e+00> : vector<8xf32>
    %26 = vector.multi_reduction <add>, %25, %cst_13 [1] : vector<8x128xf32> to vector<8xf32>
    %27 = vector.shape_cast %26 : vector<8xf32> to vector<8x1xf32>
    %cst_14 = arith.constant 1.562500e-02 : f32
    %28 = vector.broadcast %cst_14 : f32 to vector<8x1xf32>
    %29 = arith.mulf %27, %28 : vector<8x1xf32>
    %cst_15 = arith.constant 9.99999974E-6 : f32
    %30 = vector.broadcast %cst_15 : f32 to vector<8x1xf32>
    %31 = arith.addf %29, %30 : vector<8x1xf32>
    %32 = math.rsqrt %31 : vector<8x1xf32>
    %33 = vector.broadcast %32 : vector<8x1xf32> to vector<8x128xf32>
    %34 = arith.mulf %24, %33 : vector<8x128xf32>
    %35 = vector.broadcast %9 : vector<1x128xf32> to vector<8x128xf32>
    %36 = arith.mulf %34, %35 : vector<8x128xf32>
    %37 = vector.broadcast %11 : vector<1x128xf32> to vector<8x128xf32>
    %38 = arith.addf %36, %37 : vector<8x128xf32>
    %cst_16 = arith.constant 0.000000e+00 : f32
    %39 = vector.broadcast %cst_16 : f32 to vector<8x128xf32>
    %40 = arith.maximumf %38, %39 : vector<8x128xf32>
    %41 = arith.truncf %40 : vector<8x128xf32> to vector<8x128xbf16>
    %c0_17 = arith.constant 0 : index
    %c0_18 = arith.constant 0 : index
    %42 = vector.load %arg6[%c0_17, %c0_18] : memref<128x128xbf16, #tpu.memory_space<vmem>>, vector<128x128xbf16>
    %cst_19 = arith.constant dense<0.000000e+00> : vector<8x128xf32>
    %43 = tpu.matmul %41, %42, %cst_19 {dimension_numbers = #tpu.dot_dimension_numbers<[1], [0], [0], [1], [0, 0, 1, 1], [], []>} : vector<8x128xbf16>, vector<128x128xbf16>, vector<8x128xf32> -> vector<8x128xf32>
    %c0_20 = arith.constant 0 : index
    %c0_21 = arith.constant 0 : index
    %44 = vector.load %arg7[%c0_20, %c0_21] : memref<1x128xbf16, #tpu.memory_space<vmem>>, vector<1x128xbf16>
    %45 = arith.extf %44 : vector<1x128xbf16> to vector<1x128xf32>
    %46 = vector.broadcast %45 : vector<1x128xf32> to vector<8x128xf32>
    %47 = arith.addf %43, %46 : vector<8x128xf32>
    %c0_22 = arith.constant 0 : index
    %c0_23 = arith.constant 0 : index
    %48 = vector.load %arg8[%c0_22, %c0_23] : memref<1x128xbf16, #tpu.memory_space<vmem>>, vector<1x128xbf16>
    %49 = arith.extf %48 : vector<1x128xbf16> to vector<1x128xf32>
    %c0_24 = arith.constant 0 : index
    %c0_25 = arith.constant 0 : index
    %50 = vector.load %arg9[%c0_24, %c0_25] : memref<1x128xbf16, #tpu.memory_space<vmem>>, vector<1x128xbf16>
    %51 = arith.extf %50 : vector<1x128xbf16> to vector<1x128xf32>
    %52 = tpu.iota {dimensions = array<i32: 1>} : vector<8x128xi32>
    %c32_i32 = arith.constant 32 : i32
    %53 = vector.broadcast %c32_i32 : i32 to vector<8x128xi32>
    %54 = arith.cmpi slt, %52, %53 : vector<8x128xi32>
    %cst_26 = arith.constant 0.000000e+00 : f32
    %55 = vector.broadcast %cst_26 : f32 to vector<8x128xf32>
    %56 = arith.select %54, %47, %55 : vector<8x128xi1>, vector<8x128xf32>
    %cst_27 = arith.constant dense<0.000000e+00> : vector<8xf32>
    %57 = vector.multi_reduction <add>, %56, %cst_27 [1] : vector<8x128xf32> to vector<8xf32>
    %58 = vector.shape_cast %57 : vector<8xf32> to vector<8x1xf32>
    %cst_28 = arith.constant 3.125000e-02 : f32
    %59 = vector.broadcast %cst_28 : f32 to vector<8x1xf32>
    %60 = arith.mulf %58, %59 : vector<8x1xf32>
    %61 = vector.broadcast %60 : vector<8x1xf32> to vector<8x128xf32>
    %62 = arith.subf %47, %61 : vector<8x128xf32>
    %cst_29 = arith.constant 0.000000e+00 : f32
    %63 = vector.broadcast %cst_29 : f32 to vector<8x128xf32>
    %64 = arith.select %54, %62, %63 : vector<8x128xi1>, vector<8x128xf32>
    %65 = arith.mulf %64, %64 : vector<8x128xf32>
    %cst_30 = arith.constant dense<0.000000e+00> : vector<8xf32>
    %66 = vector.multi_reduction <add>, %65, %cst_30 [1] : vector<8x128xf32> to vector<8xf32>
    %67 = vector.shape_cast %66 : vector<8xf32> to vector<8x1xf32>
    %cst_31 = arith.constant 3.125000e-02 : f32
    %68 = vector.broadcast %cst_31 : f32 to vector<8x1xf32>
    %69 = arith.mulf %67, %68 : vector<8x1xf32>
    %cst_32 = arith.constant 9.99999974E-6 : f32
    %70 = vector.broadcast %cst_32 : f32 to vector<8x1xf32>
    %71 = arith.addf %69, %70 : vector<8x1xf32>
    %72 = math.rsqrt %71 : vector<8x1xf32>
    %73 = vector.broadcast %72 : vector<8x1xf32> to vector<8x128xf32>
    %74 = arith.mulf %64, %73 : vector<8x128xf32>
    %75 = vector.broadcast %49 : vector<1x128xf32> to vector<8x128xf32>
    %76 = arith.mulf %74, %75 : vector<8x128xf32>
    %77 = vector.broadcast %51 : vector<1x128xf32> to vector<8x128xf32>
    %78 = arith.addf %76, %77 : vector<8x128xf32>
    %cst_33 = arith.constant 0.000000e+00 : f32
    %79 = vector.broadcast %cst_33 : f32 to vector<8x128xf32>
    %80 = arith.maximumf %78, %79 : vector<8x128xf32>
    %c0_34 = arith.constant 0 : index
    %c0_35 = arith.constant 0 : index
    %81 = vector.load %arg10[%c0_34, %c0_35] : memref<8x128xf32, #tpu.memory_space<vmem>>, vector<8x128xf32>
    tpu.vector_store %arg10[%c0_34, %c0_35], %80 {strides = array<i32>} : memref<8x128xf32, #tpu.memory_space<vmem>>, vector<8x128xf32>,
    return
  }
  func.func @transform_0(%arg0: i32) -> (i32, i32) {
    %c0_i32 = arith.constant 0 : i32
    %c0_i32_0 = arith.constant 0 : i32
    return %arg0, %c0_i32 : i32, i32
  }
  func.func @transform_1(%arg0: i32) -> (i32, i32) {
    %c0_i32 = arith.constant 0 : i32
    %c0_i32_0 = arith.constant 0 : i32
    %c0_i32_1 = arith.constant 0 : i32
    return %c0_i32, %c0_i32_0 : i32, i32
  }
  func.func @transform_2(%arg0: i32) -> (i32, i32) {
    %c0_i32 = arith.constant 0 : i32
    %c0_i32_0 = arith.constant 0 : i32
    %c0_i32_1 = arith.constant 0 : i32
    return %c0_i32, %c0_i32_0 : i32, i32
  }
  func.func @transform_3(%arg0: i32) -> (i32, i32) {
    %c0_i32 = arith.constant 0 : i32
    %c0_i32_0 = arith.constant 0 : i32
    %c0_i32_1 = arith.constant 0 : i32
    return %c0_i32, %c0_i32_0 : i32, i32
  }
  func.func @transform_4(%arg0: i32) -> (i32, i32) {
    %c0_i32 = arith.constant 0 : i32
    %c0_i32_0 = arith.constant 0 : i32
    %c0_i32_1 = arith.constant 0 : i32
    return %c0_i32, %c0_i32_0 : i32, i32
  }
  func.func @transform_5(%arg0: i32) -> (i32, i32) {
    %c0_i32 = arith.constant 0 : i32
    %c0_i32_0 = arith.constant 0 : i32
    %c0_i32_1 = arith.constant 0 : i32
    return %c0_i32, %c0_i32_0 : i32, i32
  }
  func.func @transform_6(%arg0: i32) -> (i32, i32) {
    %c0_i32 = arith.constant 0 : i32
    %c0_i32_0 = arith.constant 0 : i32
    %c0_i32_1 = arith.constant 0 : i32
    return %c0_i32, %c0_i32_0 : i32, i32
  }
  func.func @transform_7(%arg0: i32) -> (i32, i32) {
    %c0_i32 = arith.constant 0 : i32
    %c0_i32_0 = arith.constant 0 : i32
    %c0_i32_1 = arith.constant 0 : i32
    return %c0_i32, %c0_i32_0 : i32, i32
  }
  func.func @transform_8(%arg0: i32) -> (i32, i32) {
    %c0_i32 = arith.constant 0 : i32
    %c0_i32_0 = arith.constant 0 : i32
    %c0_i32_1 = arith.constant 0 : i32
    return %c0_i32, %c0_i32_0 : i32, i32
  }
  func.func @transform_9(%arg0: i32) -> (i32, i32) {
    %c0_i32 = arith.constant 0 : i32
    %c0_i32_0 = arith.constant 0 : i32
    return %arg0, %c0_i32 : i32, i32
  }
}

</mosaic_0001>

<bundles_post_ra>
// kernel: tpu_custom_call.1
= control target key start
LH: loop header
LB: loop body
LE: loop exit
PB: predicated region body
PF: predicated region fallthrough
CT: control target
= control target key end

     0   :  { %14 = vsyncpa [#allocation3], 0  ;;  %s1450_s0 = inlined_call_operand.hbm [shape: f32[16,128], index: 0, kind: input, shape index: {}]   ;;  %s1451_s1 = inlined_call_operand.hbm [shape: bf16[128,128], index: 1, kind: input, shape index: {}]   ;;  %s1452_s2 = inlined_call_operand.vmem [shape: bf16[1,128], index: 2, kind: input, shape index: {}]   ;;  %s1453_s3 = inlined_call_operand.vmem [shape: bf16[1,128], index: 3, kind: input, shape index: {}]   ;;  %s1454_s4 = inlined_call_operand.vmem [shape: bf16[1,128], index: 4, kind: input, shape index: {}]   ;;  %s1455_s5 = inlined_call_operand.hbm [shape: bf16[128,128], index: 5, kind: input, shape index: {}]   ;;  %s1456_s6 = inlined_call_operand.vmem [shape: bf16[1,128], index: 6, kind: input, shape index: {}]   ;;  %s1457_s7 = inlined_call_operand.vmem [shape: bf16[1,128], index: 7, kind: input, shape index: {}]   ;;  %s1458_s8 = inlined_call_operand.vmem [shape: bf16[1,128], index: 8, kind: input, shape index: {}]   ;;  %s1459_s9 = inlined_call_operand.hbm [shape: f32[16,128], index: 9, kind: output, shape index: {}]  }
   0x1   :  { %16 = vsyncpa [#allocation3 + $0x1], 0 }
   0x2   :  { %17 = vsyncpa [#allocation6], 0 }
   0x3   :  { %18 = vsyncpa [#allocation4], 0 }
   0x4   :  { %20 = vsyncpa [#allocation4 + $0x1], 0  ;;  %s1162_s30 = smov 0   ;;  %s1164_s10 = smov 0  }
   0x5   :  { %s1166_s11 = smov 0   ;;  %s1168_s12 = smov 0  }
   0x6 LB: > { %s1183_s13 = sadd.s32 4294967295, %s1102_s12   ;;  %s765_s14 = sadd.s32 4294967294, %s1102_s12   ;;  %s1102_s12 = sphi %s1168_s12, %s1482_s12   ;;  %s1098_s11 = sphi %s1166_s11, %s1481_s11   ;;  %s1094_s10 = sphi %s1164_s10, %s1480_s10   ;;  %s1090_s30 = sphi %s1162_s30, %s1479_s30  }
   0x7   : > { %p46_p0 = scmp.ne.s32.totalorder %s1094_s10, %s1090_s30  ;;  %p1460_p1 = scmp.eq.s32.totalorder %s1183_s13, 0 }
   0x8   : > { %p244_p3 = scmp.eq.s32.totalorder %s765_s14, 1  ;;  %p766_p5 = scmp.ge.s32.totalorder %s1102_s12, 1 }
   0x9   : > { %p1192_p4 = por %p1460_p1, %p46_p0  ;;  %p251_p7 = scmp.lt.s32.totalorder %s1102_s12, 3 }
   0xa   : > { %p1197_p6 = por %p244_p3, %p46_p0  ;;  %s1104_s18 = smov [#allocation5]  }
   0xb   : > { %s1464_s15 = scalar_select %p1192_p4, 1, 0 }
   0xc   : > { %s1465_s16 = scalar_select %p1197_p6, 1, 0 }
   0xd   : > { %p1202_p8 = pnand %p766_p5, %p251_p7  ;;  %s263_s19 = sshll.u32 %s1104_s18, 4  ;;  %s1206_s19 = int_to_ptr.vmem [resolvable:$true] %s263_s19 }
   0xe   : > { %1466 = sst [smem:[#allocation12_spill]] %s1465_s16  ;;  %s1105_s21 = smov [#allocation7]  }
   0xf   : > { %p867_p9 = pneg %p1202_p8  ;;  %s285_s22 = sshll.u32 %s1105_s21, 4  ;;  %s1217_s22 = int_to_ptr.vmem [resolvable:$true] %s285_s22 }
  0x10   : > { %s946_s25 = scalar_lea.hbm %s1451_s1, 1024 }
  0x11   : > { %p1213_p11 = pnand %p867_p9, %p1460_p1  ;;  %p947_p12 = scmp.ne.s32.totalorder %s1451_s1, %s946_s25 }
  0x12   : > { %p953_p5 = scmp.lt.u32.totalorder %s946_s25, %s1451_s1 }
  0x13   : > { %p948_p13 = pneg %p1213_p11 }
  0x15   : > { %p949_p0 = pnand %p948_p13, %p947_p12 }
  0x17   : > { %p950_p3 = pneg %p949_p0 }
  0x19   : > { %p955_p7 = pnand %p953_p5, %p950_p3 }
  0x1b   : > { %958 = shalt.err (!%p955_p7)
}
  0x1c   : > { %s959_s14 = scalar_lea.vmem %s1206_s19, 1024  ;;  %p967_p2 = scmp.lt.s32.totalorder %s1206_s19, %s1206_s19 }
  0x1d   : > { %p960_p9 = scmp.ne.s32.totalorder %s1206_s19, %s959_s14  ;;  %p968_p12 = scmp.lt.s32.totalorder %s959_s14, %s959_s14 }
  0x1f   : > { %p962_p10 = pnand %p960_p9, %p948_p13  ;;  %p969_p0 = por %p968_p12, %p967_p2 }
  0x21   : > { %p963_p1 = pneg %p962_p10 }
  0x23   : > { %p970_p6 = pnand %p969_p0, %p963_p1 }
  0x25   : > { %973 = shalt.err (!%p970_p6)
}
  0x26   : > { %s1106_s18 = smov 64   ;;  %s1107_s21 = smov 4  }
  0x27   : > { %870 = dma.hbm_to_vmem [thread:$0]  (!%p1213_p11), %s1451_s1, 1024, %s1206_s19, [#allocation6], %s1106_s18, %s1106_s18, %s1107_s21  }
  0x28   : > { %s974_s27 = scalar_lea.hbm %s1455_s5, 1024 }
  0x29   : > { %p975_p2 = scmp.ne.s32.totalorder %s1455_s5, %s974_s27  ;;  %p981_p10 = scmp.lt.u32.totalorder %s974_s27, %s1455_s5 }
  0x2b   : > { %p977_p1 = pnand %p975_p2, %p948_p13 }
  0x2d   : > { %p978_p6 = pneg %p977_p1 }
  0x2f   : > { %p983_p3 = pnand %p981_p10, %p978_p6 }
  0x31   : > { %986 = shalt.err (!%p983_p3)
}
  0x32   : > { %s987_s19 = scalar_lea.vmem %s1217_s22, 1024  ;;  %p995_p12 = scmp.lt.s32.totalorder %s1217_s22, %s1217_s22 }
  0x33   : > { %p988_p5 = scmp.ne.s32.totalorder %s1217_s22, %s987_s19  ;;  %p996_p0 = scmp.lt.s32.totalorder %s987_s19, %s987_s19 }
  0x35   : > { %p990_p7 = pnand %p988_p5, %p948_p13  ;;  %p997_p2 = por %p996_p0, %p995_p12 }
  0x37   : > { %p991_p9 = pneg %p990_p7 }
  0x39   : > { %p998_p1 = pnand %p997_p2, %p991_p9 }
  0x3b   : > { %1001 = shalt.err (!%p998_p1)
}
  0x3c   : > { %873 = dma.hbm_to_vmem [thread:$0]  (!%p1213_p11), %s1455_s5, 1024, %s1217_s22, [#allocation6], %s1106_s18, %s1106_s18, %s1107_s21  }
  0x3d   : > { %s1272_s24 = sadd.s32 1, %s1102_s12   ;;  %s33_s20 = sadd.s32 1, %s1098_s11 }
  0x3e   : > { %s30_s25 = ssub.s32 %s1102_s12, %s1272_s24  ;;  %p40_p13 = scmp.ne.s32.totalorder %s1098_s11, %s1094_s10 }
  0x3f   : > { %p31_p6 = scmp.eq.s32.totalorder %s30_s25, 0  ;;  %p41_p10 = scmp.eq.s32.totalorder %s1102_s12, 0 }
  0x40   : > { %p1469_p3 = scmp.eq.s32.totalorder %s1183_s13, 1  ;;  %p884_p7 = scmp.lt.s32.totalorder %s1102_s12, 2 }
  0x41   : > { %s1288_s27 = scalar_select %p31_p6, %s1098_s11, %s33_s20  }
  0x42   : > { %p1282_p5 = por %p1469_p3, %p40_p13  ;;  %p42_p9 = por %p41_p10, %p40_p13 }
  0x43   : > { %s308_s28 = sand.u32 1, %s1098_s11   ;;  %s771_s22 = sshll.u32 %s1102_s12, 7 }
  0x44   : > { %s1470_s26 = scalar_select %p1282_p5, 1, 0 }
  0x45   : > { %s770_s29 = sshll.u32 %s308_s28, 3  ;;  %s1295_s14 = scalar_lea.hbm %s1450_s0, %s771_s22 }
  0x46   : > { %s312_s19 = scalar_lea.vmem [#allocation2], %s770_s29  ;;  %p1299_p11 = pnand %p884_p7, %p42_p9 }
  0x47   : > { %s319_s16 = sshll.u32 %s312_s19, 4  ;;  %s309_s20 = scalar_lea.sflag [#allocation3], %s308_s28  ;;  %s1297_s16 = int_to_ptr.vmem [resolvable:$true] %s319_s16 }
  0x48   : > { %s1002_s25 = scalar_lea.hbm %s1295_s14, 128  ;;  %p1004_p0 = pneg %p1299_p11 }
  0x49   : > { %p1003_p12 = scmp.ne.s32.totalorder %s1295_s14, %s1002_s25  ;;  %s1007_s18 = scalar_lea.hbm %s1450_s0, 256 }
  0x4a   : > { %p1008_p13 = scmp.lt.u32.totalorder %s1295_s14, %s1450_s0  ;;  %p1009_p6 = scmp.lt.u32.totalorder %s1007_s18, %s1002_s25 }
  0x4b   : > { %p1005_p2 = pnand %p1004_p0, %p1003_p12  ;;  %p1011_p3 = scmp.lt.u32.totalorder %s1002_s25, %s1295_s14 }
  0x4c   : > { %p1010_p10 = por %p1009_p6, %p1008_p13 }
  0x4d   : > { %p1006_p1 = pneg %p1005_p2 }
  0x4e   : > { %p1012_p7 = por %p1011_p3, %p1010_p10 }
  0x50   : > { %p1013_p9 = pnand %p1012_p7, %p1006_p1 }
  0x52   : > { %1016 = shalt.err (!%p1013_p9)
}
  0x53   : > { %s1017_s28 = scalar_lea.vmem %s1297_s16, 128  ;;  %s1108_s22 = smov [#allocation2]  }
  0x54   : > { %p1018_p12 = scmp.ne.s32.totalorder %s1297_s16, %s1017_s28  ;;  %s1022_s29 = sshll.u32 %s1108_s22, 4  ;;  %s1023_s29 = int_to_ptr.vmem [resolvable:$false] %s1022_s29 }
  0x55   : > { %s1024_s21 = scalar_lea.vmem %s1023_s29, 256  ;;  %p1025_p4 = scmp.lt.s32.totalorder %s1297_s16, %s1023_s29 }
  0x56   : > { %p1020_p2 = pnand %p1018_p12, %p1004_p0  ;;  %p1026_p13 = scmp.lt.s32.totalorder %s1024_s21, %s1017_s28 }
  0x58   : > { %p1021_p5 = pneg %p1020_p2  ;;  %p1027_p6 = por %p1026_p13, %p1025_p4 }
  0x5a   : > { %p1028_p10 = pnand %p1027_p6, %p1021_p5 }
  0x5c   : > { %1031 = shalt.err (!%p1028_p10)
}
  0x5d   : > { %877 = dma.hbm_to_vmem [thread:$0]  (!%p1299_p11), %s1295_s14, 128, %s1297_s16, %s309_s20  }
  0x5e   : > { %328 = sbr.rel (%p1202_p8) target bundleno = 1213 (0x4bd), region = 56  ;;  %s1331_s25 = sand.u32 (!%p1202_p8), 1, %s1094_s10  }
  0x5f   : > { %s773_s18 = sshll.u32 (!%p1202_p8), %s1331_s25, 3  ;;  %s331_s19 = scalar_lea.sflag (!%p1202_p8), [#allocation3], %s1331_s25 }
  0x60   : > { %s1337_s28 = scalar_lea.vmem (!%p1202_p8), [#allocation2], %s773_s18  ;;  %p1472_p4 = scmp.ne.s32.totalorder (!%p1202_p8), %s1464_s15, 0 }
  0x65   : > { %1077 = dma.done.wait (%p1472_p4), %s331_s19, 128  }
  0x66   : > { %1079 = vsyncadd (%p1472_p4), %s331_s19, 4294967168  ;;  %p1473_p5 = scmp.eq.s32.totalorder %s1183_s13, 0 }
  0x68   : > { %1081 = dma.done.wait (%p1473_p5), [#allocation6], 2048   ;;  %p1474_p8 = pmov %p1473_p5 }
  0x69   : > { %v1109_v0 = vmov 0.0   ;;  %vm1110_vm0 = vmmov 0   ;;  %v926_v1 = vld [vmem:[#allocation5] sm:$0xff]   ;;  %v927_v2 = vld [vmem:[#allocation5 + $0x8] sm:$0xff]   ;;  %v928_v3 = vld [vmem:[#allocation5 + $0x10] sm:$0xff]   ;;  %v398_v11 = vlaneseq  ;;  %s794_s17 = sshll.u32 %s1183_s13, 7 }
  0x6a   : > { %1083 = vsyncadd (%p1474_p8), [#allocation6], 4294965248  ;;  %815 = vmatprep.subr.bf16.mxu0 %v1109_v0  ;;  %831 = vmatprep.mubr.msk.bf16.mxu0 %vm1110_vm0, %v1109_v0  ;;  %v929_v4 = vld [vmem:[#allocation5 + $0x18] sm:$0xff]   ;;  %v930_v5 = vld [vmem:[#allocation5 + $0x20] sm:$0xff]   ;;  %s376_s14 = scalar_lea.vmem [#allocation8], %s773_s18  ;;  %s1406_s22 = scalar_lea.hbm %s1459_s9, %s794_s17 }
  0x6b   : > { %835 = vmatprep.subr.bf16.mxu1 %v1109_v0  ;;  %851 = vmatprep.mubr.msk.bf16.mxu1 %vm1110_vm0, %v1109_v0  ;;  %v931_v6 = vld [vmem:[#allocation5 + $0x28] sm:$0xff]   ;;  %v932_v7 = vld [vmem:[#allocation5 + $0x30] sm:$0xff]   ;;  %v933_v8 = vld [vmem:[#allocation5 + $0x38] sm:$0xff]   ;;  %v399_v12 = vshrl.u32 %v398_v11, 7  ;;  %v1364_v16 = vand.u32 127, %v398_v11  ;;  %s676_s16 = sshll.u32 %s376_s14, 4  ;;  %s1408_s16 = int_to_ptr.vmem [resolvable:$true] %s676_s16 }
  0x6c   : > { %816 = vmatpush3.bf16.msra.mxu0 %v926_v1  ;;  %v378_v9 = vld [vmem:[%s1337_s28] sm:$0xff]  ;;  %v934_v24 = vld [vmem:[#allocation7] sm:$0xff]   ;;  %v935_v25 = vld [vmem:[#allocation7 + $0x8] sm:$0xff]   ;;  %s663_s29 = scalar_lea.sflag [#allocation4], %s1331_s25  ;;  %s1032_s21 = scalar_lea.vmem %s1408_s16, 128 }
  0x6d   : > { %817 = vmatprep.subr.bf16.mxu0 %v1109_v0  ;;  %v379_v10 = vpack.c.bf16 %v378_v9, %v378_v9  ;;  %v396_v13 = vld [vmem:[%s1452_s2] sm:$0x1]  ;;  %v1362_v15 = vsub.s32 0, %v399_v12  ;;  %vm496_vm1 = vcmp.lt.s32.totalorder %v1364_v16, 64  ;;  %836 = vmatpush3.bf16.msra.mxu1 %v934_v24  ;;  %v937_v32 = vld [vmem:[#allocation7 + $0x18] sm:$0xff]   ;;  %v938_v33 = vld [vmem:[#allocation7 + $0x20] sm:$0xff]   ;;  %p1033_p11 = scmp.ne.s32.totalorder %s1408_s16, %s1032_s21 }
  0x6e   : > { %v397_v14 = vunpack.c.l.bf16 %v396_v13  ;;  %837 = vmatprep.subr.bf16.mxu1 %v1109_v0  ;;  %v936_v31 = vld [vmem:[#allocation7 + $0x10] sm:$0xff]   ;;  %v939_v34 = vld [vmem:[#allocation7 + $0x28] sm:$0xff]   ;;  %v941_v36 = vld [vmem:[#allocation7 + $0x38] sm:$0xff]   ;;  %vm636_vm2 = vcmp.lt.s32.totalorder %v1364_v16, 32  ;;  %p1475_p0 = scmp.ne.s32.totalorder %s1470_s26, 0  ;;  %s1111_s13 = smov [#allocation8]  }
  0x6f   : > { %v940_v35 = vld [vmem:[#allocation7 + $0x30] sm:$0xff]   ;;  %s1036_s18 = sshll.u32 %s1111_s13, 4  ;;  %s1037_s18 = int_to_ptr.vmem [resolvable:$false] %s1036_s18 }
  0x70   : > { %818 = vmatpush3.bf16.msra.mxu0 %v927_v2  ;;  %v401_v17 = vrot.slane %v397_v14, %v1362_v15  ;;  %v490_v40 = vld [vmem:[%s1453_s3] sm:$0x1]  ;;  %p1034_p1 = pnand %p1033_p11, %p1475_p0  ;;  %s1038_s19 = scalar_lea.vmem %s1037_s18, 256 }
  0x71   : > { %819 = vmatprep.subr.bf16.mxu0 %v1109_v0  ;;  %838 = vmatpush3.bf16.msra.mxu1 %v935_v25  ;;  %v492_v41 = vld [vmem:[%s1454_s4] sm:$0x1]  ;;  %v491_v42 = vunpack.c.l.bf16 %v490_v40  ;;  %p1039_p7 = scmp.lt.s32.totalorder %s1408_s16, %s1037_s18  ;;  %p1040_p9 = scmp.lt.s32.totalorder %s1038_s19, %s1032_s21 }
  0x72   : > { %839 = vmatprep.subr.bf16.mxu1 %v1109_v0  ;;  %v493_v43 = vunpack.c.l.bf16 %v492_v41  ;;  %v538_v52 = vld [vmem:[%s1456_s6] sm:$0x1]  ;;  %p1035_p3 = pneg %p1034_p1 }
  0x73   : > { %v513_v44 = vrot.slane %v491_v42, %v1362_v15  ;;  %v539_v53 = vunpack.c.l.bf16 %v538_v52  ;;  %p1041_p12 = por %p1040_p9, %p1039_p7 }
  0x74   : > { %820 = vmatpush3.bf16.msra.mxu0 %v928_v3  ;;  %v518_v47 = vrot.slane %v493_v43, %v1362_v15 }
  0x75   : > { %821 = vmatprep.subr.bf16.mxu0 %v1109_v0  ;;  %840 = vmatpush3.bf16.msra.mxu1 %v936_v31  ;;  %v543_v54 = vrot.slane %v539_v53, %v1362_v15  ;;  %p1042_p2 = pnand %p1041_p12, %p1035_p3 }
  0x76   : > { %841 = vmatprep.subr.bf16.mxu1 %v1109_v0 }
  0x78   : > { %822 = vmatpush3.bf16.msra.mxu0 %v929_v4 }
  0x79   : > { %823 = vmatprep.subr.bf16.mxu0 %v1109_v0  ;;  %842 = vmatpush3.bf16.msra.mxu1 %v937_v32 }
  0x7a   : > { %843 = vmatprep.subr.bf16.mxu1 %v1109_v0 }
  0x7c   : > { %824 = vmatpush3.bf16.msra.mxu0 %v930_v5  ;;  %v632_v5 = vld [vmem:[%s1457_s7] sm:$0x1] }
  0x7d   : > { %825 = vmatprep.subr.bf16.mxu0 %v1109_v0  ;;  %844 = vmatpush3.bf16.msra.mxu1 %v938_v33 }
  0x7e   : > { %845 = vmatprep.subr.bf16.mxu1 %v1109_v0 }
  0x80   : > { %826 = vmatpush3.bf16.msra.mxu0 %v931_v6  ;;  %v634_v6 = vld [vmem:[%s1458_s8] sm:$0x1] }
  0x81   : > { %827 = vmatprep.subr.bf16.mxu0 %v1109_v0  ;;  %846 = vmatpush3.bf16.msra.mxu1 %v939_v34 }
  0x82   : > { %847 = vmatprep.subr.bf16.mxu1 %v1109_v0 }
  0x84   : > { %828 = vmatpush3.bf16.msra.mxu0 %v932_v7  ;;  %v633_v7 = vunpack.c.l.bf16 %v632_v5 }
  0x85   : > { %829 = vmatprep.subr.bf16.mxu0 %v1109_v0  ;;  %848 = vmatpush3.bf16.msra.mxu1 %v940_v35 }
  0x86   : > { %849 = vmatprep.subr.bf16.mxu1 %v1109_v0  ;;  %v653_v9 = vrot.slane %v633_v7, %v1362_v15 }
  0x88   : > { %830 = vmatpush3.bf16.msra.mxu0 %v933_v8  ;;  %v635_v8 = vunpack.c.l.bf16 %v634_v6 }
  0x89   : > { %850 = vmatpush3.bf16.msra.mxu1 %v941_v36 }
  0x8a   : > { %v658_v12 = vrot.slane %v635_v8, %v1362_v15 }
  0x8b   : > { %832 = vmatmul.mubr.bf16.vlgmr.msra.gmra.mrb[0].mxu0 %v379_v10 }
 0x15e   : > { %v484_v18 = vpop.f32.mrb[0].mxu0 }
 0x15f   : > { %v485_v19 = vadd.f32 %v484_v18, %v401_v17  ;;  %v833_v20 = vpop.f32.mrb[1].mxu0 }
 0x160   : > { %v487_v21 = vpop.f32.mrb[2].mxu0 }
 0x161   : > { %v834_v22 = vpop.f32.mrb[3].mxu0  ;;  %v497_v23 = vsel %vm496_vm1, %v485_v19, 0.0 }
 0x162   : > { %498 = vadd.xlane.f32.xlu0 %v497_v23 }
 0x1ef   : > { %v499_v26 = vpop.xlane.xlu0 %498 }
 0x1f0   : > { %v500_v27 = vmul.f32 0.015625, %v499_v26 }
 0x1f2   : > { %v501_v28 = vsub.f32 %v485_v19, %v500_v27 }
 0x1f4   : > { %v502_v29 = vsel %vm496_vm1, %v501_v28, 0.0 }
 0x1f5   : > { %v503_v30 = vmul.f32 %v502_v29, %v502_v29 }
 0x1f7   : > { %504 = vadd.xlane.f32.xlu0 %v503_v30 }
 0x284   : > { %v505_v37 = vpop.xlane.xlu0 %504 }
 0x285   : > { %v506_v38 = vmul.f32 0.015625, %v505_v37 }
 0x287   : > { %v507_v39 = vadd.f32 1e-05, %v506_v38 }
 0x289   : > { %942 = vrsqrt.f32 %v507_v39 }
 0x293   : > { %v943_v45 = vpop.eup %942 }
 0x294   : > { %v509_v46 = vmul.f32 %v943_v45, %v502_v29 }
 0x296   : > { %v514_v48 = vmul.f32 %v513_v44, %v509_v46 }
 0x298   : > { %v519_v49 = vadd.f32 %v518_v47, %v514_v48 }
 0x29a   : > { %v520_v50 = vmax.f32 %v519_v49, 0.0 }
 0x29c   : > { %v521_v51 = vpack.c.bf16 %v520_v50, %v520_v50 }
 0x29e   : > { %852 = vmatmul.mubr.bf16.vlgmr.msra.gmra.mrb[0].mxu1 %v521_v51 }
 0x371   : > { %v626_v55 = vpop.f32.mrb[0].mxu1 }
 0x372   : > { %v627_v56 = vadd.f32 %v626_v55, %v543_v54  ;;  %v853_v57 = vpop.f32.mrb[1].mxu1 }
 0x373   : > { %v629_v58 = vpop.f32.mrb[2].mxu1 }
 0x374   : > { %v854_v59 = vpop.f32.mrb[3].mxu1  ;;  %v637_v60 = vsel %vm636_vm2, %v627_v56, 0.0 }
 0x375   : > { %638 = vadd.xlane.f32.xlu1 %v637_v60 }
 0x402   : > { %v639_v61 = vpop.xlane.xlu1 %638 }
 0x403   : > { %v640_v62 = vmul.f32 0.03125, %v639_v61 }
 0x405   : > { %v641_v63 = vsub.f32 %v627_v56, %v640_v62 }
 0x407   : > { %v642_v0 = vsel %vm636_vm2, %v641_v63, 0.0 }
 0x408   : > { %v643_v1 = vmul.f32 %v642_v0, %v642_v0 }
 0x40a   : > { %644 = vadd.xlane.f32.xlu1 %v643_v1 }
 0x497   : > { %v645_v2 = vpop.xlane.xlu1 %644 }
 0x498   : > { %v646_v3 = vmul.f32 0.03125, %v645_v2 }
 0x49a   : > { %v647_v4 = vadd.f32 1e-05, %v646_v3 }
 0x49c   : > { %944 = vrsqrt.f32 %v647_v4 }
 0x4a6   : > { %v945_v10 = vpop.eup %944 }
 0x4a7   : > { %v649_v11 = vmul.f32 %v945_v10, %v642_v0 }
 0x4a9   : > { %v654_v13 = vmul.f32 %v653_v9, %v649_v11 }
 0x4ab   : > { %v659_v14 = vadd.f32 %v658_v12, %v654_v13 }
 0x4ad   : > { %v660_v16 = vmax.f32 %v659_v14, 0.0 }
 0x4af   : > { %661 = vst [vmem:[%s376_s14] sm:$0xff] %v660_v16 }
 0x4b0   : > { %1045 = shalt.err (!%p1042_p2)
}
 0x4b1   : > { %s1046_s25 = scalar_lea.hbm %s1406_s22, 128  ;;  %s1050_s17 = scalar_lea.hbm %s1459_s9, 256 }
 0x4b2   : > { %p1047_p13 = scmp.ne.s32.totalorder %s1406_s22, %s1046_s25  ;;  %p1051_p4 = scmp.lt.u32.totalorder %s1406_s22, %s1459_s9 }
 0x4b3   : > { %p1052_p5 = scmp.lt.u32.totalorder %s1050_s17, %s1046_s25  ;;  %p1054_p11 = scmp.lt.u32.totalorder %s1046_s25, %s1406_s22 }
 0x4b4   : > { %p1048_p6 = pnand %p1047_p13, %p1475_p0 }
 0x4b5   : > { %p1053_p8 = por %p1052_p5, %p1051_p4 }
 0x4b6   : > { %p1049_p10 = pneg %p1048_p6 }
 0x4b7   : > { %p1055_p1 = por %p1054_p11, %p1053_p8 }
 0x4b9   : > { %p1056_p3 = pnand %p1055_p1, %p1049_p10 }
 0x4bb   : > { %1059 = shalt.err (!%p1056_p3)
}
 0x4bc   : > { %865 = dma.vmem_to_hbm [thread:$0]  (%p1475_p0), %s1408_s16, 128, %s1406_s22, %s663_s29  }
 0x4bd PF: > { %s1476_s20 = sld [smem:[#allocation12_spill]]  ;;  %s688_s21 = sand.u32 1, %s1090_s30  }
 0x4be   : > { %p1478_p9 = scmp.ge.s32.totalorder %s1102_s12, 2  ;;  %s689_s13 = scalar_lea.sflag [#allocation4], %s688_s21 }
 0x4c3   : > { %p1477_p7 = scmp.ne.s32.totalorder %s1476_s20, 0 }
 0x4c5   : > { %p879_p12 = pnand %p1478_p9, %p1477_p7 }
 0x4c7   : > { %1085 = dma.done.wait (!%p879_p12), %s689_s13, 128  }
 0x4c8   : > { %1087 = vsyncadd (!%p879_p12), %s689_s13, 4294967168  ;;  %p23_p2 = scmp.ge.s32.totalorder %s1272_s24, 4   ;;  %s1479_s30 = smov %s1094_s10 }
 0x4c9   : > { %s1480_s10 = smov %s1098_s11  ;;  %s1481_s11 = smov %s1288_s27 }
 0x4ca   : > { %s1482_s12 = smov %s1272_s24  ;;  %25 = sbr.rel (!%p23_p2) target bundleno = 6 (0x6), region = 109 }
 0x4d1   :  { %694 = vsyncpa [#allocation3], 1 }
 0x4d2   :  { %696 = vsyncpa [#allocation3 + $0x1], 1 }
 0x4d3   :  { %697 = vsyncpa [#allocation6], 1 }
 0x4d4   :  { %698 = vsyncpa [#allocation4], 1 }
 0x4d5   :  { %700 = vsyncpa [#allocation4 + $0x1], 1 }

// kernel: tpu_custom_call.1
= control target key start
LH: loop header
LB: loop body
LE: loop exit
PB: predicated region body
PF: predicated region fallthrough
CT: control target
= control target key end

     0   :  { %14 = vsyncpa [#allocation3], 0  ;;  %s1450_s0 = inlined_call_operand.hbm [shape: f32[16,128], index: 0, kind: input, shape index: {}]   ;;  %s1451_s1 = inlined_call_operand.hbm [shape: bf16[128,128], index: 1, kind: input, shape index: {}]   ;;  %s1452_s2 = inlined_call_operand.vmem [shape: bf16[1,128], index: 2, kind: input, shape index: {}]   ;;  %s1453_s3 = inlined_call_operand.vmem [shape: bf16[1,128], index: 3, kind: input, shape index: {}]   ;;  %s1454_s4 = inlined_call_operand.vmem [shape: bf16[1,128], index: 4, kind: input, shape index: {}]   ;;  %s1455_s5 = inlined_call_operand.hbm [shape: bf16[128,128], index: 5, kind: input, shape index: {}]   ;;  %s1456_s6 = inlined_call_operand.vmem [shape: bf16[1,128], index: 6, kind: input, shape index: {}]   ;;  %s1457_s7 = inlined_call_operand.vmem [shape: bf16[1,128], index: 7, kind: input, shape index: {}]   ;;  %s1458_s8 = inlined_call_operand.vmem [shape: bf16[1,128], index: 8, kind: input, shape index: {}]   ;;  %s1459_s9 = inlined_call_operand.hbm [shape: f32[16,128], index: 9, kind: output, shape index: {}]  }
   0x1   :  { %16 = vsyncpa [#allocation3 + $0x1], 0 }
   0x2   :  { %17 = vsyncpa [#allocation6], 0 }
   0x3   :  { %18 = vsyncpa [#allocation4], 0 }
   0x4   :  { %20 = vsyncpa [#allocation4 + $0x1], 0  ;;  %s1162_s30 = smov 0   ;;  %s1164_s10 = smov 0  }
   0x5   :  { %s1166_s11 = smov 0   ;;  %s1168_s12 = smov 0  }
   0x6 LB: > { %s1183_s13 = sadd.s32 4294967295, %s1102_s12   ;;  %s765_s14 = sadd.s32 4294967294, %s1102_s12   ;;  %s1102_s12 = sphi %s1168_s12, %s1482_s12   ;;  %s1098_s11 = sphi %s1166_s11, %s1481_s11   ;;  %s1094_s10 = sphi %s1164_s10, %s1480_s10   ;;  %s1090_s30 = sphi %s1162_s30, %s1479_s30  }
   0x7   : > { %p46_p0 = scmp.ne.s32.totalorder %s1094_s10, %s1090_s30  ;;  %p1460_p1 = scmp.eq.s32.totalorder %s1183_s13, 0 }
   0x8   : > { %p244_p3 = scmp.eq.s32.totalorder %s765_s14, 1  ;;  %p766_p5 = scmp.ge.s32.totalorder %s1102_s12, 1 }
   0x9   : > { %p1192_p4 = por %p1460_p1, %p46_p0  ;;  %p251_p7 = scmp.lt.s32.totalorder %s1102_s12, 3 }
   0xa   : > { %p1197_p6 = por %p244_p3, %p46_p0  ;;  %s1104_s18 = smov [#allocation5]  }
   0xb   : > { %s1464_s15 = scalar_select %p1192_p4, 1, 0 }
   0xc   : > { %s1465_s16 = scalar_select %p1197_p6, 1, 0 }
   0xd   : > { %p1202_p8 = pnand %p766_p5, %p251_p7  ;;  %s263_s19 = sshll.u32 %s1104_s18, 4  ;;  %s1206_s19 = int_to_ptr.vmem [resolvable:$true] %s263_s19 }
   0xe   : > { %1466 = sst [smem:[#allocation12_spill]] %s1465_s16  ;;  %s1105_s21 = smov [#allocation7]  }
   0xf   : > { %p867_p9 = pneg %p1202_p8  ;;  %s285_s22 = sshll.u32 %s1105_s21, 4  ;;  %s1217_s22 = int_to_ptr.vmem [resolvable:$true] %s285_s22 }
  0x10   : > { %s946_s25 = scalar_lea.hbm %s1451_s1, 1024 }
  0x11   : > { %p1213_p11 = pnand %p867_p9, %p1460_p1  ;;  %p947_p12 = scmp.ne.s32.totalorder %s1451_s1, %s946_s25 }
  0x12   : > { %p953_p5 = scmp.lt.u32.totalorder %s946_s25, %s1451_s1 }
  0x13   : > { %p948_p13 = pneg %p1213_p11 }
  0x15   : > { %p949_p0 = pnand %p948_p13, %p947_p12 }
  0x17   : > { %p950_p3 = pneg %p949_p0 }
  0x19   : > { %p955_p7 = pnand %p953_p5, %p950_p3 }
  0x1b   : > { %958 = shalt.err (!%p955_p7)
}
  0x1c   : > { %s959_s14 = scalar_lea.vmem %s1206_s19, 1024  ;;  %p967_p2 = scmp.lt.s32.totalorder %s1206_s19, %s1206_s19 }
  0x1d   : > { %p960_p9 = scmp.ne.s32.totalorder %s1206_s19, %s959_s14  ;;  %p968_p12 = scmp.lt.s32.totalorder %s959_s14, %s959_s14 }
  0x1f   : > { %p962_p10 = pnand %p960_p9, %p948_p13  ;;  %p969_p0 = por %p968_p12, %p967_p2 }
  0x21   : > { %p963_p1 = pneg %p962_p10 }
  0x23   : > { %p970_p6 = pnand %p969_p0, %p963_p1 }
  0x25   : > { %973 = shalt.err (!%p970_p6)
}
  0x26   : > { %s1106_s18 = smov 64   ;;  %s1107_s21 = smov 4  }
  0x27   : > { %870 = dma.hbm_to_vmem [thread:$0]  (!%p1213_p11), %s1451_s1, 1024, %s1206_s19, [#allocation6], %s1106_s18, %s1106_s18, %s1107_s21  }
  0x28   : > { %s974_s27 = scalar_lea.hbm %s1455_s5, 1024 }
  0x29   : > { %p975_p2 = scmp.ne.s32.totalorder %s1455_s5, %s974_s27  ;;  %p981_p10 = scmp.lt.u32.totalorder %s974_s27, %s1455_s5 }
  0x2b   : > { %p977_p1 = pnand %p975_p2, %p948_p13 }
  0x2d   : > { %p978_p6 = pneg %p977_p1 }
  0x2f   : > { %p983_p3 = pnand %p981_p10, %p978_p6 }
  0x31   : > { %986 = shalt.err (!%p983_p3)
}
  0x32   : > { %s987_s19 = scalar_lea.vmem %s1217_s22, 1024  ;;  %p995_p12 = scmp.lt.s32.totalorder %s1217_s22, %s1217_s22 }
  0x33   : > { %p988_p5 = scmp.ne.s32.totalorder %s1217_s22, %s987_s19  ;;  %p996_p0 = scmp.lt.s32.totalorder %s987_s19, %s987_s19 }
  0x35   : > { %p990_p7 = pnand %p988_p5, %p948_p13  ;;  %p997_p2 = por %p996_p0, %p995_p12 }
  0x37   : > { %p991_p9 = pneg %p990_p7 }
  0x39   : > { %p998_p1 = pnand %p997_p2, %p991_p9 }
  0x3b   : > { %1001 = shalt.err (!%p998_p1)
}
  0x3c   : > { %873 = dma.hbm_to_vmem [thread:$0]  (!%p1213_p11), %s1455_s5, 1024, %s1217_s22, [#allocation6], %s1106_s18, %s1106_s18, %s1107_s21  }
  0x3d   : > { %s1272_s24 = sadd.s32 1, %s1102_s12   ;;  %s33_s20 = sadd.s32 1, %s1098_s11 }
  0x3e   : > { %s30_s25 = ssub.s32 %s1102_s12, %s1272_s24  ;;  %p40_p13 = scmp.ne.s32.totalorder %s1098_s11, %s1094_s10 }
  0x3f   : > { %p31_p6 = scmp.eq.s32.totalorder %s30_s25, 0  ;;  %p41_p10 = scmp.eq.s32.totalorder %s1102_s12, 0 }
  0x40   : > { %p1469_p3 = scmp.eq.s32.totalorder %s1183_s13, 1  ;;  %p884_p7 = scmp.lt.s32.totalorder %s1102_s12, 2 }
  0x41   : > { %s1288_s27 = scalar_select %p31_p6, %s1098_s11, %s33_s20  }
  0x42   : > { %p1282_p5 = por %p1469_p3, %p40_p13  ;;  %p42_p9 = por %p41_p10, %p40_p13 }
  0x43   : > { %s308_s28 = sand.u32 1, %s1098_s11   ;;  %s771_s22 = sshll.u32 %s1102_s12, 7 }
  0x44   : > { %s1470_s26 = scalar_select %p1282_p5, 1, 0 }
  0x45   : > { %s770_s29 = sshll.u32 %s308_s28, 3  ;;  %s1295_s14 = scalar_lea.hbm %s1450_s0, %s771_s22 }
  0x46   : > { %s312_s19 = scalar_lea.vmem [#allocation2], %s770_s29  ;;  %p1299_p11 = pnand %p884_p7, %p42_p9 }
  0x47   : > { %s319_s16 = sshll.u32 %s312_s19, 4  ;;  %s309_s20 = scalar_lea.sflag [#allocation3], %s308_s28  ;;  %s1297_s16 = int_to_ptr.vmem [resolvable:$true] %s319_s16 }
  0x48   : > { %s1002_s25 = scalar_lea.hbm %s1295_s14, 128  ;;  %p1004_p0 = pneg %p1299_p11 }
  0x49   : > { %p1003_p12 = scmp.ne.s32.totalorder %s1295_s14, %s1002_s25  ;;  %s1007_s18 = scalar_lea.hbm %s1450_s0, 256 }
  0x4a   : > { %p1008_p13 = scmp.lt.u32.totalorder %s1295_s14, %s1450_s0  ;;  %p1009_p6 = scmp.lt.u32.totalorder %s1007_s18, %s1002_s25 }
  0x4b   : > { %p1005_p2 = pnand %p1004_p0, %p1003_p12  ;;  %p1011_p3 = scmp.lt.u32.totalorder %s1002_s25, %s1295_s14 }
  0x4c   : > { %p1010_p10 = por %p1009_p6, %p1008_p13 }
  0x4d   : > { %p1006_p1 = pneg %p1005_p2 }
  0x4e   : > { %p1012_p7 = por %p1011_p3, %p1010_p10 }
  0x50   : > { %p1013_p9 = pnand %p1012_p7, %p1006_p1 }
  0x52   : > { %1016 = shalt.err (!%p1013_p9)
}
  0x53   : > { %s1017_s28 = scalar_lea.vmem %s1297_s16, 128  ;;  %s1108_s22 = smov [#allocation2]  }
  0x54   : > { %p1018_p12 = scmp.ne.s32.totalorder %s1297_s16, %s1017_s28  ;;  %s1022_s29 = sshll.u32 %s1108_s22, 4  ;;  %s1023_s29 = int_to_ptr.vmem [resolvable:$false] %s1022_s29 }
  0x55   : > { %s1024_s21 = scalar_lea.vmem %s1023_s29, 256  ;;  %p1025_p4 = scmp.lt.s32.totalorder %s1297_s16, %s1023_s29 }
  0x56   : > { %p1020_p2 = pnand %p1018_p12, %p1004_p0  ;;  %p1026_p13 = scmp.lt.s32.totalorder %s1024_s21, %s1017_s28 }
  0x58   : > { %p1021_p5 = pneg %p1020_p2  ;;  %p1027_p6 = por %p1026_p13, %p1025_p4 }
  0x5a   : > { %p1028_p10 = pnand %p1027_p6, %p1021_p5 }
  0x5c   : > { %1031 = shalt.err (!%p1028_p10)
}
  0x5d   : > { %877 = dma.hbm_to_vmem [thread:$0]  (!%p1299_p11), %s1295_s14, 128, %s1297_s16, %s309_s20  }
  0x5e   : > { %328 = sbr.rel (%p1202_p8) target bundleno = 1213 (0x4bd), region = 56  ;;  %s1331_s25 = sand.u32 (!%p1202_p8), 1, %s1094_s10  }
  0x5f   : > { %s773_s18 = sshll.u32 (!%p1202_p8), %s1331_s25, 3  ;;  %s331_s19 = scalar_lea.sflag (!%p1202_p8), [#allocation3], %s1331_s25 }
  0x60   : > { %s1337_s28 = scalar_lea.vmem (!%p1202_p8), [#allocation2], %s773_s18  ;;  %p1472_p4 = scmp.ne.s32.totalorder (!%p1202_p8), %s1464_s15, 0 }
  0x65   : > { %1077 = dma.done.wait (%p1472_p4), %s331_s19, 128  }
  0x66   : > { %1079 = vsyncadd (%p1472_p4), %s331_s19, 4294967168  ;;  %p1473_p5 = scmp.eq.s32.totalorder %s1183_s13, 0 }
  0x68   : > { %1081 = dma.done.wait (%p1473_p5), [#allocation6], 2048   ;;  %p1474_p8 = pmov %p1473_p5 }
  0x69   : > { %v1109_v0 = vmov 0.0   ;;  %vm1110_vm0 = vmmov 0   ;;  %v926_v1 = vld [vmem:[#allocation5] sm:$0xff]   ;;  %v927_v2 = vld [vmem:[#allocation5 + $0x8] sm:$0xff]   ;;  %v928_v3 = vld [vmem:[#allocation5 + $0x10] sm:$0xff]   ;;  %v398_v11 = vlaneseq  ;;  %s794_s17 = sshll.u32 %s1183_s13, 7 }
  0x6a   : > { %1083 = vsyncadd (%p1474_p8), [#allocation6], 4294965248  ;;  %815 = vmatprep.subr.bf16.mxu0 %v1109_v0  ;;  %831 = vmatprep.mubr.msk.bf16.mxu0 %vm1110_vm0, %v1109_v0  ;;  %v929_v4 = vld [vmem:[#allocation5 + $0x18] sm:$0xff]   ;;  %v930_v5 = vld [vmem:[#allocation5 + $0x20] sm:$0xff]   ;;  %s376_s14 = scalar_lea.vmem [#allocation8], %s773_s18  ;;  %s1406_s22 = scalar_lea.hbm %s1459_s9, %s794_s17 }
  0x6b   : > { %835 = vmatprep.subr.bf16.mxu1 %v1109_v0  ;;  %851 = vmatprep.mubr.msk.bf16.mxu1 %vm1110_vm0, %v1109_v0  ;;  %v931_v6 = vld [vmem:[#allocation5 + $0x28] sm:$0xff]   ;;  %v932_v7 = vld [vmem:[#allocation5 + $0x30] sm:$0xff]   ;;  %v933_v8 = vld [vmem:[#allocation5 + $0x38] sm:$0xff]   ;;  %v399_v12 = vshrl.u32 %v398_v11, 7  ;;  %v1364_v16 = vand.u32 127, %v398_v11  ;;  %s676_s16 = sshll.u32 %s376_s14, 4  ;;  %s1408_s16 = int_to_ptr.vmem [resolvable:$true] %s676_s16 }
  0x6c   : > { %816 = vmatpush3.bf16.msra.mxu0 %v926_v1  ;;  %v378_v9 = vld [vmem:[%s1337_s28] sm:$0xff]  ;;  %v934_v24 = vld [vmem:[#allocation7] sm:$0xff]   ;;  %v935_v25 = vld [vmem:[#allocation7 + $0x8] sm:$0xff]   ;;  %s663_s29 = scalar_lea.sflag [#allocation4], %s1331_s25  ;;  %s1032_s21 = scalar_lea.vmem %s1408_s16, 128 }
  0x6d   : > { %817 = vmatprep.subr.bf16.mxu0 %v1109_v0  ;;  %v379_v10 = vpack.c.bf16 %v378_v9, %v378_v9  ;;  %v396_v13 = vld [vmem:[%s1452_s2] sm:$0x1]  ;;  %v1362_v15 = vsub.s32 0, %v399_v12  ;;  %vm496_vm1 = vcmp.lt.s32.totalorder %v1364_v16, 64  ;;  %836 = vmatpush3.bf16.msra.mxu1 %v934_v24  ;;  %v937_v32 = vld [vmem:[#allocation7 + $0x18] sm:$0xff]   ;;  %v938_v33 = vld [vmem:[#allocation7 + $0x20] sm:$0xff]   ;;  %p1033_p11 = scmp.ne.s32.totalorder %s1408_s16, %s1032_s21 }
  0x6e   : > { %v397_v14 = vunpack.c.l.bf16 %v396_v13  ;;  %837 = vmatprep.subr.bf16.mxu1 %v1109_v0  ;;  %v936_v31 = vld [vmem:[#allocation7 + $0x10] sm:$0xff]   ;;  %v939_v34 = vld [vmem:[#allocation7 + $0x28] sm:$0xff]   ;;  %v941_v36 = vld [vmem:[#allocation7 + $0x38] sm:$0xff]   ;;  %vm636_vm2 = vcmp.lt.s32.totalorder %v1364_v16, 32  ;;  %p1475_p0 = scmp.ne.s32.totalorder %s1470_s26, 0  ;;  %s1111_s13 = smov [#allocation8]  }
  0x6f   : > { %v940_v35 = vld [vmem:[#allocation7 + $0x30] sm:$0xff]   ;;  %s1036_s18 = sshll.u32 %s1111_s13, 4  ;;  %s1037_s18 = int_to_ptr.vmem [resolvable:$false] %s1036_s18 }
  0x70   : > { %818 = vmatpush3.bf16.msra.mxu0 %v927_v2  ;;  %v401_v17 = vrot.slane %v397_v14, %v1362_v15  ;;  %v490_v40 = vld [vmem:[%s1453_s3] sm:$0x1]  ;;  %p1034_p1 = pnand %p1033_p11, %p1475_p0  ;;  %s1038_s19 = scalar_lea.vmem %s1037_s18, 256 }
  0x71   : > { %819 = vmatprep.subr.bf16.mxu0 %v1109_v0  ;;  %838 = vmatpush3.bf16.msra.mxu1 %v935_v25  ;;  %v492_v41 = vld [vmem:[%s1454_s4] sm:$0x1]  ;;  %v491_v42 = vunpack.c.l.bf16 %v490_v40  ;;  %p1039_p7 = scmp.lt.s32.totalorder %s1408_s16, %s1037_s18  ;;  %p1040_p9 = scmp.lt.s32.totalorder %s1038_s19, %s1032_s21 }
  0x72   : > { %839 = vmatprep.subr.bf16.mxu1 %v1109_v0  ;;  %v493_v43 = vunpack.c.l.bf16 %v492_v41  ;;  %v538_v52 = vld [vmem:[%s1456_s6] sm:$0x1]  ;;  %p1035_p3 = pneg %p1034_p1 }
  0x73   : > { %v513_v44 = vrot.slane %v491_v42, %v1362_v15  ;;  %v539_v53 = vunpack.c.l.bf16 %v538_v52  ;;  %p1041_p12 = por %p1040_p9, %p1039_p7 }
  0x74   : > { %820 = vmatpush3.bf16.msra.mxu0 %v928_v3  ;;  %v518_v47 = vrot.slane %v493_v43, %v1362_v15 }
  0x75   : > { %821 = vmatprep.subr.bf16.mxu0 %v1109_v0  ;;  %840 = vmatpush3.bf16.msra.mxu1 %v936_v31  ;;  %v543_v54 = vrot.slane %v539_v53, %v1362_v15  ;;  %p1042_p2 = pnand %p1041_p12, %p1035_p3 }
  0x76   : > { %841 = vmatprep.subr.bf16.mxu1 %v1109_v0 }
  0x78   : > { %822 = vmatpush3.bf16.msra.mxu0 %v929_v4 }
  0x79   : > { %823 = vmatprep.subr.bf16.mxu0 %v1109_v0  ;;  %842 = vmatpush3.bf16.msra.mxu1 %v937_v32 }
  0x7a   : > { %843 = vmatprep.subr.bf16.mxu1 %v1109_v0 }
  0x7c   : > { %824 = vmatpush3.bf16.msra.mxu0 %v930_v5  ;;  %v632_v5 = vld [vmem:[%s1457_s7] sm:$0x1] }
  0x7d   : > { %825 = vmatprep.subr.bf16.mxu0 %v1109_v0  ;;  %844 = vmatpush3.bf16.msra.mxu1 %v938_v33 }
  0x7e   : > { %845 = vmatprep.subr.bf16.mxu1 %v1109_v0 }
  0x80   : > { %826 = vmatpush3.bf16.msra.mxu0 %v931_v6  ;;  %v634_v6 = vld [vmem:[%s1458_s8] sm:$0x1] }
  0x81   : > { %827 = vmatprep.subr.bf16.mxu0 %v1109_v0  ;;  %846 = vmatpush3.bf16.msra.mxu1 %v939_v34 }
  0x82   : > { %847 = vmatprep.subr.bf16.mxu1 %v1109_v0 }
  0x84   : > { %828 = vmatpush3.bf16.msra.mxu0 %v932_v7  ;;  %v633_v7 = vunpack.c.l.bf16 %v632_v5 }
  0x85   : > { %829 = vmatprep.subr.bf16.mxu0 %v1109_v0  ;;  %848 = vmatpush3.bf16.msra.mxu1 %v940_v35 }
  0x86   : > { %849 = vmatprep.subr.bf16.mxu1 %v1109_v0  ;;  %v653_v9 = vrot.slane %v633_v7, %v1362_v15 }
  0x88   : > { %830 = vmatpush3.bf16.msra.mxu0 %v933_v8  ;;  %v635_v8 = vunpack.c.l.bf16 %v634_v6 }
  0x89   : > { %850 = vmatpush3.bf16.msra.mxu1 %v941_v36 }
  0x8a   : > { %v658_v12 = vrot.slane %v635_v8, %v1362_v15 }
  0x8b   : > { %832 = vmatmul.mubr.bf16.vlgmr.msra.gmra.mrb[0].mxu0 %v379_v10 }
 0x15e   : > { %v484_v18 = vpop.f32.mrb[0].mxu0 }
 0x15f   : > { %v485_v19 = vadd.f32 %v484_v18, %v401_v17  ;;  %v833_v20 = vpop.f32.mrb[1].mxu0 }
 0x160   : > { %v487_v21 = vpop.f32.mrb[2].mxu0 }
 0x161   : > { %v834_v22 = vpop.f32.mrb[3].mxu0  ;;  %v497_v23 = vsel %vm496_vm1, %v485_v19, 0.0 }
 0x162   : > { %498 = vadd.xlane.f32.xlu0 %v497_v23 }
 0x1ef   : > { %v499_v26 = vpop.xlane.xlu0 %498 }
 0x1f0   : > { %v500_v27 = vmul.f32 0.015625, %v499_v26 }
 0x1f2   : > { %v501_v28 = vsub.f32 %v485_v19, %v500_v27 }
 0x1f4   : > { %v502_v29 = vsel %vm496_vm1, %v501_v28, 0.0 }
 0x1f5   : > { %v503_v30 = vmul.f32 %v502_v29, %v502_v29 }
 0x1f7   : > { %504 = vadd.xlane.f32.xlu0 %v503_v30 }
 0x284   : > { %v505_v37 = vpop.xlane.xlu0 %504 }
 0x285   : > { %v506_v38 = vmul.f32 0.015625, %v505_v37 }
 0x287   : > { %v507_v39 = vadd.f32 1e-05, %v506_v38 }
 0x289   : > { %942 = vrsqrt.f32 %v507_v39 }
 0x293   : > { %v943_v45 = vpop.eup %942 }
 0x294   : > { %v509_v46 = vmul.f32 %v943_v45, %v502_v29 }
 0x296   : > { %v514_v48 = vmul.f32 %v513_v44, %v509_v46 }
 0x298   : > { %v519_v49 = vadd.f32 %v518_v47, %v514_v48 }
 0x29a   : > { %v520_v50 = vmax.f32 %v519_v49, 0.0 }
 0x29c   : > { %v521_v51 = vpack.c.bf16 %v520_v50, %v520_v50 }
 0x29e   : > { %852 = vmatmul.mubr.bf16.vlgmr.msra.gmra.mrb[0].mxu1 %v521_v51 }
 0x371   : > { %v626_v55 = vpop.f32.mrb[0].mxu1 }
 0x372   : > { %v627_v56 = vadd.f32 %v626_v55, %v543_v54  ;;  %v853_v57 = vpop.f32.mrb[1].mxu1 }
 0x373   : > { %v629_v58 = vpop.f32.mrb[2].mxu1 }
 0x374   : > { %v854_v59 = vpop.f32.mrb[3].mxu1  ;;  %v637_v60 = vsel %vm636_vm2, %v627_v56, 0.0 }
 0x375   : > { %638 = vadd.xlane.f32.xlu1 %v637_v60 }
 0x402   : > { %v639_v61 = vpop.xlane.xlu1 %638 }
 0x403   : > { %v640_v62 = vmul.f32 0.03125, %v639_v61 }
 0x405   : > { %v641_v63 = vsub.f32 %v627_v56, %v640_v62 }
 0x407   : > { %v642_v0 = vsel %vm636_vm2, %v641_v63, 0.0 }
 0x408   : > { %v643_v1 = vmul.f32 %v642_v0, %v642_v0 }
 0x40a   : > { %644 = vadd.xlane.f32.xlu1 %v643_v1 }
 0x497   : > { %v645_v2 = vpop.xlane.xlu1 %644 }
 0x498   : > { %v646_v3 = vmul.f32 0.03125, %v645_v2 }
 0x49a   : > { %v647_v4 = vadd.f32 1e-05, %v646_v3 }
 0x49c   : > { %944 = vrsqrt.f32 %v647_v4 }
 0x4a6   : > { %v945_v10 = vpop.eup %944 }
 0x4a7   : > { %v649_v11 = vmul.f32 %v945_v10, %v642_v0 }
 0x4a9   : > { %v654_v13 = vmul.f32 %v653_v9, %v649_v11 }
 0x4ab   : > { %v659_v14 = vadd.f32 %v658_v12, %v654_v13 }
 0x4ad   : > { %v660_v16 = vmax.f32 %v659_v14, 0.0 }
 0x4af   : > { %661 = vst [vmem:[%s376_s14] sm:$0xff] %v660_v16 }
 0x4b0   : > { %1045 = shalt.err (!%p1042_p2)
}
 0x4b1   : > { %s1046_s25 = scalar_lea.hbm %s1406_s22, 128  ;;  %s1050_s17 = scalar_lea.hbm %s1459_s9, 256 }
 0x4b2   : > { %p1047_p13 = scmp.ne.s32.totalorder %s1406_s22, %s1046_s25  ;;  %p1051_p4 = scmp.lt.u32.totalorder %s1406_s22, %s1459_s9 }
 0x4b3   : > { %p1052_p5 = scmp.lt.u32.totalorder %s1050_s17, %s1046_s25  ;;  %p1054_p11 = scmp.lt.u32.totalorder %s1046_s25, %s1406_s22 }
 0x4b4   : > { %p1048_p6 = pnand %p1047_p13, %p1475_p0 }
 0x4b5   : > { %p1053_p8 = por %p1052_p5, %p1051_p4 }
 0x4b6   : > { %p1049_p10 = pneg %p1048_p6 }
 0x4b7   : > { %p1055_p1 = por %p1054_p11, %p1053_p8 }
 0x4b9   : > { %p1056_p3 = pnand %p1055_p1, %p1049_p10 }
 0x4bb   : > { %1059 = shalt.err (!%p1056_p3)
}
 0x4bc   : > { %865 = dma.vmem_to_hbm [thread:$0]  (%p1475_p0), %s1408_s16, 128, %s1406_s22, %s663_s29  }
 0x4bd PF: > { %s1476_s20 = sld [smem:[#allocation12_spill]]  ;;  %s688_s21 = sand.u32 1, %s1090_s30  }
 0x4be   : > { %p1478_p9 = scmp.ge.s32.totalorder %s1102_s12, 2  ;;  %s689_s13 = scalar_lea.sflag [#allocation4], %s688_s21 }
 0x4c3   : > { %p1477_p7 = scmp.ne.s32.totalorder %s1476_s20, 0 }
 0x4c5   : > { %p879_p12 = pnand %p1478_p9, %p1477_p7 }
 0x4c7   : > { %1085 = dma.done.wait (!%p879_p12), %s689_s13, 128  }
 0x4c8   : > { %1087 = vsyncadd (!%p879_p12), %s689_s13, 4294967168  ;;  %p23_p2 = scmp.ge.s32.totalorder %s1272_s24, 4   ;;  %s1479_s30 = smov %s1094_s10 }
 0x4c9   : > { %s1480_s10 = smov %s1098_s11  ;;  %s1481_s11 = smov %s1288_s27 }
 0x4ca   : > { %s1482_s12 = smov %s1272_s24  ;;  %25 = sbr.rel (!%p23_p2) target bundleno = 6 (0x6), region = 109 }
 0x4d1   :  { %694 = vsyncpa [#allocation3], 1 }
 0x4d2   :  { %696 = vsyncpa [#allocation3 + $0x1], 1 }
 0x4d3   :  { %697 = vsyncpa [#allocation6], 1 }
 0x4d4   :  { %698 = vsyncpa [#allocation4], 1 }
 0x4d5   :  { %700 = vsyncpa [#allocation4 + $0x1], 1 }

</bundles_post_ra>
